<compile_context>
chip_gen: v7x
topology: tpu7x:2x2x1
jax: 0.10.0
libtpu: 0.0.40
codegen_flags: <defaults>
</compile_context>

<pallas_src>
import math
from functools import partial

import jax
import jax.numpy as jnp
from jax import lax
from jax.experimental import pallas as pl
from jax.experimental.pallas import tpu as pltpu


# Keep MXU operands in f32 so the kernel matches the f32 PyTorch semantics tightly.
# TODO(synk): switch to bfloat16 matmul operands (keep f32 accumulation + f32
# elementwise/state) for ~2x MXU throughput on v5e/v6e/v7x once a looser
# tolerance vs the f32 reference is acceptable.
_MATMUL_DTYPE = jnp.float32


# ----------------------------------------------------------------------------
# Kernel 1: time-parallel input projection  xg = x2d @ Wx + bias
# ----------------------------------------------------------------------------
def _input_proj_kernel(x_ref, w_ref, b_ref, o_ref):
    o_ref[...] = (
        jnp.dot(x_ref[...].astype(_MATMUL_DTYPE),
                w_ref[...].astype(_MATMUL_DTYPE),
                preferred_element_type=jnp.float32)
        + b_ref[...])


def _input_projection(x2d, Wx, b2d, *, row_block=512):
    rows, in_dim = x2d.shape
    gdim = b2d.shape[1]
    rb = rows if rows <= row_block else row_block
    return pl.pallas_call(
        _input_proj_kernel,
        out_shape=jax.ShapeDtypeStruct((rows, gdim), jnp.float32),
        grid_spec=pltpu.PrefetchScalarGridSpec(
            num_scalar_prefetch=0,
            grid=(pl.cdiv(rows, rb),),
            in_specs=[
                pl.BlockSpec((rb, in_dim), lambda r: (r, 0)),
                pl.BlockSpec((in_dim, gdim), lambda r: (0, 0)),
                pl.BlockSpec((1, gdim), lambda r: (0, 0)),
            ],
            out_specs=pl.BlockSpec((rb, gdim), lambda r: (r, 0)),
        ),
        compiler_params=pltpu.CompilerParams(
            dimension_semantics=("parallel",)),
    )(x2d, Wx, b2d)


# ----------------------------------------------------------------------------
# Kernel 2: peephole-LSTM recurrence over a block of T_BLOCK timesteps.
# Grid = (batch tiles ["parallel"], time blocks ["arbitrary"]).
# Cell/hidden state live in VMEM scratch and persist across time blocks.
# ----------------------------------------------------------------------------
def _recurrence_kernel(xg_ref, mask_ref, wh_ref, pi_ref, pf_ref, po_ref,
                       out_ref, c_sc, h_sc, *, hidden_size, t_block):
    tb = pl.program_id(1)          # time-block index (innermost / sequential axis)

    @pl.when(tb == 0)
    def _():
        c_sc[...] = jnp.zeros_like(c_sc)
        h_sc[...] = jnp.zeros_like(h_sc)

    HS = hidden_size
    # Block-constant operands: load once, closed over by the time loop.
    wh = wh_ref[...].astype(_MATMUL_DTYPE)    # (HS, 4*HS)
    pi = pi_ref[...]                          # (1, HS)
    pf = pf_ref[...]
    po = po_ref[...]

    def step(t, carry):
        c_prev, h_prev = carry
        # gates = x_t @ Wx + bias (precomputed, incl. forget_bias) + h_prev @ Wh
        gates = xg_ref[t] + jnp.dot(h_prev.astype(_MATMUL_DTYPE), wh,
                                    preferred_element_type=jnp.float32)
        i_t = gates[:, 0 * HS:1 * HS]
        j_t = gates[:, 1 * HS:2 * HS]
        f_t = gates[:, 2 * HS:3 * HS]          # forget_bias already folded in
        o_t = gates[:, 3 * HS:4 * HS]

        c_new = (jax.nn.sigmoid(f_t + c_prev * pf) * c_prev
                 + jax.nn.sigmoid(i_t + c_prev * pi) * jnp.tanh(j_t))
        h_new = jax.nn.sigmoid(o_t + c_new * po) * jnp.tanh(c_new)

        # 1.0 while t < seq_len[b]; else freeze state and emit zeros (PyTorch semantics).
        valid = mask_ref[t] > 0.0              # (bs_blk, 1) bool
        c_t = jnp.where(valid, c_new, c_prev)
        h_t = jnp.where(valid, h_new, h_prev)
        out_ref[t] = jnp.where(valid, h_new, 0.0)
        return (c_t, h_t)

    c_fin, h_fin = lax.fori_loop(0, t_block, step, (c_sc[...], h_sc[...]),
                                 unroll=min(t_block, 8))
    c_sc[...] = c_fin
    h_sc[...] = h_fin


def _peephole_recurrence(xg, mask, Wh, peep_i, peep_f, peep_o, *,
                         t_block, bs_block=None):
    seq_pad, bs, gdim = xg.shape
    HS = gdim // 4
    if bs_block is None:
        # On v7x (2 TCs/chip) with large batches, pass bs_block = bs // 2 so the
        # "parallel" batch axis is sharded across TensorCores. Needs bs_block % 8 == 0.
        bs_block = bs
    assert seq_pad % t_block == 0 and bs % bs_block == 0

    kernel = partial(_recurrence_kernel, hidden_size=HS, t_block=t_block)
    return pl.pallas_call(
        kernel,
        out_shape=jax.ShapeDtypeStruct((seq_pad, bs, HS), jnp.float32),
        grid_spec=pltpu.PrefetchScalarGridSpec(
            num_scalar_prefetch=0,
            grid=(bs // bs_block, seq_pad // t_block),
            in_specs=[
                pl.BlockSpec((t_block, bs_block, gdim), lambda b, tb: (tb, b, 0)),  # xg
                pl.BlockSpec((t_block, bs_block, 1), lambda b, tb: (tb, b, 0)),     # mask
                pl.BlockSpec((HS, gdim), lambda b, tb: (0, 0)),                     # Wh
                pl.BlockSpec((1, HS), lambda b, tb: (0, 0)),                        # peep_i
                pl.BlockSpec((1, HS), lambda b, tb: (0, 0)),                        # peep_f
                pl.BlockSpec((1, HS), lambda b, tb: (0, 0)),                        # peep_o
            ],
            out_specs=pl.BlockSpec((t_block, bs_block, HS), lambda b, tb: (tb, b, 0)),
            scratch_shapes=[
                pltpu.VMEM((bs_block, HS), jnp.float32),   # c_t (persists over time blocks)
                pltpu.VMEM((bs_block, HS), jnp.float32),   # h_t
            ],
        ),
        compiler_params=pltpu.CompilerParams(
            # batch axis may be split across cores; time recurrence is sequential.
            dimension_semantics=("parallel", "arbitrary")),
    )(xg, mask, Wh, peep_i, peep_f, peep_o)


# ----------------------------------------------------------------------------
# One PeepholeLSTM layer = hoisted input projection + blocked recurrence.
# ----------------------------------------------------------------------------
def peephole_lstm_layer(x, mask, W, bias, peep_i, peep_f, peep_o, *,
                        forget_bias=0.8, t_block=32):
    """x: (seq_pad, bs, in_dim) f32 (time already padded to a multiple of t_block);
    mask: (seq_pad, bs, 1) f32 validity mask. Returns (seq_pad, bs, HS)."""
    seq_pad, bs, in_dim = x.shape
    HS = peep_i.shape[0]
    assert W.shape == (in_dim + HS, 4 * HS)
    assert seq_pad % t_block == 0

    Wx = W[:in_dim]                 # (in_dim, 4*HS)
    Wh = W[in_dim:]                 # (HS, 4*HS)
    # Fold the forget-gate constant bias into the bias once, at trace time.
    b2d = bias.reshape(1, 4 * HS)
    b2d = b2d.at[:, 2 * HS:3 * HS].add(forget_bias)

    # Phase 1 (time-parallel): one big matmul over all seq_pad*bs rows.
    xg2d = _input_projection(x.reshape(seq_pad * bs, in_dim), Wx, b2d)
    xg = xg2d.reshape(seq_pad, bs, 4 * HS)

    # Phase 2 (sequential): blocked recurrence.
    return _peephole_recurrence(
        xg, mask, Wh,
        peep_i.reshape(1, HS), peep_f.reshape(1, HS), peep_o.reshape(1, HS),
        t_block=t_block)


# ----------------------------------------------------------------------------
# Encoder (peephole variant, lang=False path): a stack of PeepholeLSTM layers.
# ----------------------------------------------------------------------------
class EncoderParams:
    def __init__(self, VB_input_dim, VB_num_units, VB_num_layers):
        self.VB_input_dim = VB_input_dim
        self.VB_num_units = VB_num_units
        self.VB_num_layers = VB_num_layers


def init_encoder_weights(key, params):
    HS = params.VB_num_units
    stdv = 1.0 / math.sqrt(HS)
    layers = []
    for l in range(params.VB_num_layers):
        in_dim = params.VB_input_dim if l == 0 else HS
        key, k_w, k_pi, k_pf, k_po, k_b = jax.random.split(key, 6)
        layers.append(dict(
            W=jax.random.uniform(k_w, (in_dim + HS, 4 * HS), jnp.float32, -stdv, stdv),
            peep_i=jax.random.uniform(k_pi, (HS,), jnp.float32, -stdv, stdv),
            peep_f=jax.random.uniform(k_pf, (HS,), jnp.float32, -stdv, stdv),
            peep_o=jax.random.uniform(k_po, (HS,), jnp.float32, -stdv, stdv),
            bias=jax.random.uniform(k_b, (4 * HS,), jnp.float32, -stdv, stdv),
        ))
    return layers


def encoder_forward(weights, inp, sequence_length, *, seq_sz=None, t_block=32):
    """inp: (seq, bs, VB_input_dim); sequence_length: (bs,) int.
    Returns (bs, seq_sz, VB_num_units) with seq_sz = max(sequence_length).
    Pass seq_sz as a static Python int to avoid a device->host sync + recompiles."""
    if seq_sz is None:
        seq_sz = int(jnp.max(sequence_length))   # fallback only (host sync)

    _, bs, _ = inp.shape
    x = inp[:seq_sz].astype(jnp.float32)

    tb = min(t_block, seq_sz)
    seq_pad = ((seq_sz + tb - 1) // tb) * tb
    if seq_pad != seq_sz:
        x = jnp.pad(x, ((0, seq_pad - seq_sz), (0, 0), (0, 0)))

    # Validity mask precomputed once (keeps seq_len compares off the recurrent path).
    t_idx = jnp.arange(seq_pad, dtype=jnp.int32)[:, None]
    mask = (t_idx < sequence_length.astype(jnp.int32)[None, :]).astype(jnp.float32)
    mask = mask[:, :, None]                                      # (seq_pad, bs, 1)

    layer_input = x
    for wl in weights:
        layer_input = peephole_lstm_layer(
            layer_input, mask,
            wl["W"], wl["bias"], wl["peep_i"], wl["peep_f"], wl["peep_o"],
            forget_bias=0.8, t_block=tb)

    out = layer_input[:seq_sz]                                   # (seq_sz, bs, HS)
    return jnp.transpose(out, (1, 0, 2))                         # permute(1, 0, 2)


# ----------------------------------------------------------------------------
# Pure-JAX reference (same math, no Pallas) for correctness checking.
# ----------------------------------------------------------------------------
def _reference_layer(x, seq_len, W, bias, peep_i, peep_f, peep_o, forget_bias=0.8):
    seq, bs, _ = x.shape
    HS = peep_i.shape[0]
    c = jnp.zeros((bs, HS), jnp.float32)
    h = jnp.zeros((bs, HS), jnp.float32)
    outs = []
    for t in range(seq):
        gates = jnp.dot(jnp.concatenate([x[t], h], axis=1), W,
                        precision=lax.Precision.HIGHEST) + bias
        i_t, j_t, f_t, o_t = (gates[:, :HS], gates[:, HS:2 * HS],
                              gates[:, 2 * HS:3 * HS], gates[:, 3 * HS:])
        c_new = (jax.nn.sigmoid(f_t + forget_bias + c * peep_f) * c
                 + jax.nn.sigmoid(i_t + c * peep_i) * jnp.tanh(j_t))
        h_new = jax.nn.sigmoid(o_t + c_new * peep_o) * jnp.tanh(c_new)
        m = (seq_len <= t)[:, None]
        c = jnp.where(m, c, c_new)
        h = jnp.where(m, h, h_new)
        outs.append(jnp.where(m, 0.0, h_new))
    return jnp.stack(outs, axis=0)


def _reference_encoder(weights, inp, sequence_length):
    seq_sz = int(jnp.max(sequence_length))
    layer_input = inp[:seq_sz].astype(jnp.float32)
    for wl in weights:
        layer_input = _reference_layer(layer_input, sequence_length,
                                       wl["W"], wl["bias"], wl["peep_i"],
                                       wl["peep_f"], wl["peep_o"])
    return jnp.transpose(layer_input, (1, 0, 2))


if __name__ == "__main__":
    params = EncoderParams(VB_input_dim=4, VB_num_units=32, VB_num_layers=2)
    SEQ, BS = 8, 2

    key = jax.random.PRNGKey(0)
    key, k_x = jax.random.split(key)
    weights = init_encoder_weights(key, params)

    x = jax.random.normal(k_x, (SEQ, BS, params.VB_input_dim), jnp.float32)
    seq_lens_py = [8, 5]
    sequence_length = jnp.array(seq_lens_py, dtype=jnp.int32)
    seq_sz = max(seq_lens_py)            # static: no device->host sync, no recompiles

    out = encoder_forward(weights, x, sequence_length, seq_sz=seq_sz)
    out = jax.block_until_ready(out)

    ref = _reference_encoder(weights, x, sequence_length)
    assert out.shape == (BS, seq_sz, params.VB_num_units)
    assert jnp.allclose(out, ref, atol=1e-4, rtol=1e-4), "mismatch vs reference"

    print("KERNEL_OK")
</pallas_src>

<mosaic_0001>
module attributes {stable_mosaic.version = 11 : i64} {
  func.func @_input_proj_kernel(%arg0: i32, %arg1: memref<16x4xf32, #tpu.memory_space<vmem>>, %arg2: memref<4x128xf32, #tpu.memory_space<vmem>>, %arg3: memref<1x128xf32, #tpu.memory_space<vmem>>, %arg4: memref<16x128xf32, #tpu.memory_space<vmem>>) attributes {dimension_semantics = [#tpu.dimension_semantics<parallel>], iteration_bounds = array<i64: 1>, scalar_prefetch = 0 : i64, scratch_operands = 0 : i64, tpu.core_type = #tpu.core_type<tc>, window_params = [{transform_indices = @transform_0, window_bounds = array<i64: 16, 4>}, {pipeline_mode = #tpu.pipeline_mode<synchronous>, transform_indices = @transform_1, window_bounds = array<i64: 4, 128>}, {pipeline_mode = #tpu.pipeline_mode<synchronous>, transform_indices = @transform_2, window_bounds = array<i64: 1, 128>}, {transform_indices = @transform_3, window_bounds = array<i64: 16, 128>}]} {
    %c0 = arith.constant 0 : index
    %c0_0 = arith.constant 0 : index
    %0 = vector.load %arg1[%c0, %c0_0] : memref<16x4xf32, #tpu.memory_space<vmem>>, vector<16x4xf32>
    %c0_1 = arith.constant 0 : index
    %c0_2 = arith.constant 0 : index
    %1 = vector.load %arg2[%c0_1, %c0_2] : memref<4x128xf32, #tpu.memory_space<vmem>>, vector<4x128xf32>
    %cst = arith.constant dense<0.000000e+00> : vector<16x128xf32>
    %2 = tpu.matmul %0, %1, %cst {dimension_numbers = #tpu.dot_dimension_numbers<[1], [0], [0], [1], [0, 0, 1, 1], [], []>} : vector<16x4xf32>, vector<4x128xf32>, vector<16x128xf32> -> vector<16x128xf32>
    %c0_3 = arith.constant 0 : index
    %c0_4 = arith.constant 0 : index
    %3 = vector.load %arg3[%c0_3, %c0_4] : memref<1x128xf32, #tpu.memory_space<vmem>>, vector<1x128xf32>
    %4 = vector.broadcast %3 : vector<1x128xf32> to vector<16x128xf32>
    %5 = arith.addf %2, %4 : vector<16x128xf32>
    %c0_5 = arith.constant 0 : index
    %c0_6 = arith.constant 0 : index
    %6 = vector.load %arg4[%c0_5, %c0_6] : memref<16x128xf32, #tpu.memory_space<vmem>>, vector<16x128xf32>
    tpu.vector_store %arg4[%c0_5, %c0_6], %5 {strides = array<i32>} : memref<16x128xf32, #tpu.memory_space<vmem>>, vector<16x128xf32>,
    return
  }
  func.func @transform_0(%arg0: i32) -> (i32, i32) {
    %c0_i32 = arith.constant 0 : i32
    %c0_i32_0 = arith.constant 0 : i32
    return %arg0, %c0_i32 : i32, i32
  }
  func.func @transform_1(%arg0: i32) -> (i32, i32) {
    %c0_i32 = arith.constant 0 : i32
    %c0_i32_0 = arith.constant 0 : i32
    %c0_i32_1 = arith.constant 0 : i32
    return %c0_i32, %c0_i32_0 : i32, i32
  }
  func.func @transform_2(%arg0: i32) -> (i32, i32) {
    %c0_i32 = arith.constant 0 : i32
    %c0_i32_0 = arith.constant 0 : i32
    %c0_i32_1 = arith.constant 0 : i32
    return %c0_i32, %c0_i32_0 : i32, i32
  }
  func.func @transform_3(%arg0: i32) -> (i32, i32) {
    %c0_i32 = arith.constant 0 : i32
    %c0_i32_0 = arith.constant 0 : i32
    return %arg0, %c0_i32 : i32, i32
  }
}

</mosaic_0001>

<bundles_post_ra>
// kernel: tpu_custom_call.1
= control target key start
LH: loop header
LB: loop body
LE: loop exit
PB: predicated region body
PF: predicated region fallthrough
CT: control target
= control target key end

     0   :  { %vm32_vm0 = vcmask 1043456   ;;  %vm25_vm1 = vcmask 31744   ;;  %s215_s0 = inlined_call_operand.vmem [shape: f32[16,4], index: 0, kind: input, shape index: {}]   ;;  %s216_s1 = inlined_call_operand.vmem [shape: f32[4,128], index: 1, kind: input, shape index: {}]   ;;  %s217_s2 = inlined_call_operand.vmem [shape: f32[1,128], index: 2, kind: input, shape index: {}]   ;;  %s218_s3 = inlined_call_operand.hbm [shape: f32[16,128], index: 3, kind: output, shape index: {}]  }
   0x1   :  { %v17_v0 = vld [vmem:[%s216_s1] sm:$0xf]  ;;  %v16_v2 = vld [vmem:[%s215_s0 + $0x8] sm:$0xff] }
   0x2   :  { %v15_v1 = vld [vmem:[%s215_s0] sm:$0xff]  ;;  %136 = vmatprep.subr.msk.mxu0 %vm32_vm0, %v17_v0 }
   0x3   :  { %138 = vmatprep.mubr.msk.f32.mxu0 %vm25_vm1, %v15_v1 }
   0x4   :  { %8 = vsyncpa [#allocation3], 0  ;;  %137 = vmatpush3.msk.msra.mxu0 %vm32_vm0, %v17_v0  ;;  %v129_v3 = vld [vmem:[%s217_s2] ss:$0 sm:$0xff]  ;;  %s168_s1 = smov [#allocation2]  }
   0x5   :  { %139 = vmatmul.mubr.msk.f32.vlgmr.msra.gmra.mrb[0].mxu0 %vm25_vm1, %v16_v2  ;;  %s118_s20 = sshll.u32 %s168_s1, 4  ;;  %s119_s20 = int_to_ptr.vmem [resolvable:$true] %s118_s20 }
   0x6   :  { %s144_s21 = scalar_lea.vmem %s119_s20, 256  ;;  %p149_p1 = scmp.lt.s32.totalorder %s119_s20, %s119_s20 }
   0x7   :  { %p145_p0 = scmp.ne.s32.totalorder %s119_s20, %s144_s21  ;;  %p150_p2 = scmp.lt.s32.totalorder %s144_s21, %s144_s21 }
   0x9   :  { %p151_p3 = por %p150_p2, %p149_p1 }
   0xb   :  { %p152_p4 = pnand %p151_p3, %p145_p0 }
  0xd8   :  { %v140_v4 = vpop.f32.mrb[0].mxu0 }
  0xd9   :  { %v108_v5 = vadd.f32 %v140_v4, %v129_v3  ;;  %v102_v6 = vpop.f32.mrb[1].mxu0 }
  0xda   :  { %v103_v7 = vadd.f32 %v129_v3, %v102_v6 }
  0xdb   :  { %112 = vst [vmem:[#allocation2 + $0x8] sm:$0xff] %v108_v5 }
  0xdc   :  { %111 = vst [vmem:[#allocation2] sm:$0xff] %v103_v7 }
  0xdd   :  { %155 = shalt.err (!%p152_p4)
}
  0xde   :  { %s156_s2 = scalar_lea.hbm %s218_s3, 256 }
  0xdf   :  { %p157_p5 = scmp.ne.s32.totalorder %s218_s3, %s156_s2  ;;  %p160_p6 = scmp.lt.u32.totalorder %s156_s2, %s218_s3 }
  0xe1   :  { %p162_p7 = pnand %p160_p6, %p157_p5 }
  0xe3   :  { %165 = shalt.err (!%p162_p7)
}
  0xe4   :  { %s169_s27 = smov 128   ;;  %s170_s28 = smov 8  }
  0xe5   :  { %124 = dma.vmem_to_hbm [thread:$0]  %s119_s20, 256, %s218_s3, [#allocation3], %s169_s27, %s169_s27, %s170_s28  }
  0xe6   :  { %166 = dma.done.wait [#allocation3], 256  }
  0xe7   :  { %167 = vsyncadd [#allocation3], 4294967040 }
  0xe8   :  { %128 = vsyncpa [#allocation3], 1 }

</bundles_post_ra>
